<compile_context>
chip_gen: v6e
topology: v6e:2x2x1
jax: 0.10.0
libtpu: 0.0.40
codegen_flags: <defaults>
</compile_context>

<pallas_src>
import jax
import jax.numpy as jnp
from jax import lax
from jax.experimental import pallas as pl
from jax.experimental.pallas import tpu as pltpu


LEAKY_SLOPE = 0.01  # torch.nn.LeakyReLU default negative_slope


def _leaky_relu(x):
    # max(x, a*x) == where(x > 0, x, a*x) for 0 < a < 1, one VALU op cheaper.
    return jnp.maximum(x, LEAKY_SLOPE * x)


def _round_up(n, m):
    return ((n + m - 1) // m) * m


def _pad_to(a, shape):
    return jnp.pad(a, [(0, t - s) for s, t in zip(a.shape, shape)])


def qr_nn_kernel(x_ref,
                 w0_ref, b0_ref,
                 w1_ref, b1_ref,
                 w2_ref, b2_ref,
                 w3t_ref, b3t_ref,
                 o_ref):
    """Whole 4-layer MLP forward for one batch tile; all matmuls on the MXU.

    w0..w2 are (in_features, out_features) (hidden width zero-padded to 128);
    the output layer is pre-transposed to (dim_out, hidden) and the result is
    written transposed, (dim_out, tb), so the output store is lane-dense.
    """
    x = x_ref[...].astype(w0_ref.dtype)

    # Layer 0: dim_in -> hidden(padded), LeakyReLU.  f32 accumulation.
    h = jnp.dot(x, w0_ref[...], preferred_element_type=jnp.float32) + b0_ref[...]
    h = _leaky_relu(h)

    # Hidden layer 1.
    h = jnp.dot(h.astype(w1_ref.dtype), w1_ref[...],
                preferred_element_type=jnp.float32) + b1_ref[...]
    h = _leaky_relu(h)

    # Hidden layer 2.
    h = jnp.dot(h.astype(w2_ref.dtype), w2_ref[...],
                preferred_element_type=jnp.float32) + b2_ref[...]
    h = _leaky_relu(h)

    # Output layer, computed transposed: out_t[d, b] = sum_k w3t[d, k] * h[b, k]
    # -> (dim_out, tb).  Contraction over the last dim of both operands (the
    # same pattern as q @ k.T), so no explicit transpose is materialized.
    out_t = lax.dot_general(
        w3t_ref[...], h.astype(w3t_ref.dtype),
        dimension_numbers=(((1,), (1,)), ((), ())),
        preferred_element_type=jnp.float32) + b3t_ref[...]

    o_ref[...] = out_t.astype(o_ref.dtype)


def prepare_params(params, *, lane=128):
    """Zero-pad hidden width to a multiple of `lane` and pre-transpose the
    output layer.  params = [(w0, b0), (w1, b1), (w2, b2), (w3, b3)] with
    w_i: (in_features, out_features), b_i: (out_features,) or (1, out_features).
    Zero padding keeps the math exact (LeakyReLU(0) == 0)."""
    (w0, b0), (w1, b1), (w2, b2), (w3, b3) = params
    dim_in, H = w0.shape
    dim_out = w3.shape[1]
    Hp = _round_up(H, lane)

    w0p = _pad_to(w0, (dim_in, Hp))
    b0p = _pad_to(jnp.reshape(b0, (1, -1)), (1, Hp))
    w1p = _pad_to(w1, (Hp, Hp))
    b1p = _pad_to(jnp.reshape(b1, (1, -1)), (1, Hp))
    w2p = _pad_to(w2, (Hp, Hp))
    b2p = _pad_to(jnp.reshape(b2, (1, -1)), (1, Hp))
    w3t = _pad_to(w3, (Hp, dim_out)).T           # (dim_out, Hp)
    b3t = jnp.reshape(b3, (-1, 1))               # (dim_out, 1) column bias
    return (w0p, b0p, w1p, b1p, w2p, b2p, w3t, b3t)


def qr_nn_forward(x, params, *, batch_tile=1024, lane=128):
    """x: (B, dim_in); params as produced by init_params (w: (in, out)).
    Returns (B, dim_out), matching the torch module."""
    B, dim_in = x.shape
    w0p, b0p, w1p, b1p, w2p, b2p, w3t, b3t = prepare_params(params, lane=lane)
    dim_out = w3t.shape[0]

    # Batch tile: large to amortize per-grid-step overhead and fill the MXU,
    # multiple of 128 (lane-dense transposed output store), and chosen so the
    # grid has >= 2 steps when the batch allows (v7x dual-TC sharding).
    if B <= lane:
        tb = B
    else:
        tb = min(batch_tile, _round_up(pl.cdiv(B, 2), lane))
        tb = max(lane, (tb // lane) * lane)
    grid = (pl.cdiv(B, tb),)

    # Weights / biases: full-array blocks, constant across the batch grid.
    def const_spec(shape):
        zeros = tuple(0 for _ in shape)
        return pl.BlockSpec(shape, lambda i, _z=zeros: _z)

    out_t = pl.pallas_call(
        qr_nn_kernel,
        out_shape=jax.ShapeDtypeStruct((dim_out, B), x.dtype),
        grid_spec=pltpu.PrefetchScalarGridSpec(
            num_scalar_prefetch=0,
            grid=grid,
            in_specs=[
                pl.BlockSpec((tb, dim_in), lambda i: (i, 0)),   # x batch tile
                const_spec(w0p.shape), const_spec(b0p.shape),
                const_spec(w1p.shape), const_spec(b1p.shape),
                const_spec(w2p.shape), const_spec(b2p.shape),
                const_spec(w3t.shape), const_spec(b3t.shape),
            ],
            out_specs=pl.BlockSpec((dim_out, tb), lambda i: (0, i)),
        ),
        compiler_params=pltpu.CompilerParams(
            dimension_semantics=("parallel",)),
    )(x, w0p, b0p, w1p, b1p, w2p, b2p, w3t, b3t)

    # out_t is (dim_out, B), lane-dense from the kernel; the tiny transpose
    # back to torch's (B, dim_out) layout is a cheap XLA op on 3*B elements.
    return out_t.T


def init_params(key, dim_in, hidden, dim_out, num_hidden_layers=2):
    """Deterministic init mimicking torch.nn.Linear default:
    U(-1/sqrt(fan_in), 1/sqrt(fan_in)).  Weights stored as (in, out)."""
    dims = [dim_in] + [hidden] * (num_hidden_layers + 1) + [dim_out]
    params = []
    for fan_in, fan_out in zip(dims[:-1], dims[1:]):
        key, kw, kb = jax.random.split(key, 3)
        bound = 1.0 / jnp.sqrt(jnp.float32(fan_in))
        w = jax.random.uniform(kw, (fan_in, fan_out), jnp.float32, -bound, bound)
        b = jax.random.uniform(kb, (1, fan_out), jnp.float32, -bound, bound)
        params.append((w, b))
    return params


def reference_forward(x, params):
    h = x
    for i, (w, b) in enumerate(params):
        h = h @ w + b
        if i < len(params) - 1:
            h = jnp.where(h > 0, h, LEAKY_SLOPE * h)
    return h


if __name__ == "__main__":
    # Module configuration (consistent with QR_NN.__init__ defaults).
    quantiles = [0.1, 0.5, 0.9]
    dim_in = 16
    hidden_layer_size = 50
    num_hidden_layers = 2          # kernel is specialized to the default depth
    dim_out = len(quantiles)
    batch = 256                    # exercises 2 grid steps of tb=128

    key = jax.random.PRNGKey(0)
    kx, kp = jax.random.split(key)
    x = jax.random.normal(kx, (batch, dim_in), jnp.float32)
    params = init_params(kp, dim_in, hidden_layer_size, dim_out,
                         num_hidden_layers=num_hidden_layers)

    out = qr_nn_forward(x, params)
    out = jax.block_until_ready(out)

    # Sanity check against a pure-JAX reference of the same math.
    ref = reference_forward(x, params)
    assert out.shape == (batch, dim_out)
    assert jnp.allclose(out, ref, atol=1e-4, rtol=1e-4)

    # as_dict=True in the torch module is plain Python slicing of the output
    # columns per quantile — done outside the kernel:
    result_dict = {q: out[:, i] for i, q in enumerate(quantiles)}
    assert set(result_dict.keys()) == set(quantiles)

    print("KERNEL_OK")
</pallas_src>

<mosaic_0001>
module attributes {stable_mosaic.version = 11 : i64} {
  func.func @qr_nn_kernel(%arg0: i32, %arg1: memref<128x16xf32, #tpu.memory_space<vmem>>, %arg2: memref<16x128xf32, #tpu.memory_space<vmem>>, %arg3: memref<1x128xf32, #tpu.memory_space<vmem>>, %arg4: memref<128x128xf32, #tpu.memory_space<vmem>>, %arg5: memref<1x128xf32, #tpu.memory_space<vmem>>, %arg6: memref<128x128xf32, #tpu.memory_space<vmem>>, %arg7: memref<1x128xf32, #tpu.memory_space<vmem>>, %arg8: memref<3x128xf32, #tpu.memory_space<vmem>>, %arg9: memref<3x1xf32, #tpu.memory_space<vmem>>, %arg10: memref<3x128xf32, #tpu.memory_space<vmem>>) attributes {dimension_semantics = [#tpu.dimension_semantics<parallel>], iteration_bounds = array<i64: 2>, scalar_prefetch = 0 : i64, scratch_operands = 0 : i64, tpu.core_type = #tpu.core_type<tc>, window_params = [{transform_indices = @transform_0, window_bounds = array<i64: 128, 16>}, {pipeline_mode = #tpu.pipeline_mode<synchronous>, transform_indices = @transform_1, window_bounds = array<i64: 16, 128>}, {pipeline_mode = #tpu.pipeline_mode<synchronous>, transform_indices = @transform_2, window_bounds = array<i64: 1, 128>}, {pipeline_mode = #tpu.pipeline_mode<synchronous>, transform_indices = @transform_3, window_bounds = array<i64: 128, 128>}, {pipeline_mode = #tpu.pipeline_mode<synchronous>, transform_indices = @transform_4, window_bounds = array<i64: 1, 128>}, {pipeline_mode = #tpu.pipeline_mode<synchronous>, transform_indices = @transform_5, window_bounds = array<i64: 128, 128>}, {pipeline_mode = #tpu.pipeline_mode<synchronous>, transform_indices = @transform_6, window_bounds = array<i64: 1, 128>}, {pipeline_mode = #tpu.pipeline_mode<synchronous>, transform_indices = @transform_7, window_bounds = array<i64: 3, 128>}, {pipeline_mode = #tpu.pipeline_mode<synchronous>, transform_indices = @transform_8, window_bounds = array<i64: 3, 1>}, {transform_indices = @transform_9, window_bounds = array<i64: 3, 128>}]} {
    %c0 = arith.constant 0 : index
    %c0_0 = arith.constant 0 : index
    %0 = vector.load %arg1[%c0, %c0_0] : memref<128x16xf32, #tpu.memory_space<vmem>>, vector<128x16xf32>
    %c0_1 = arith.constant 0 : index
    %c0_2 = arith.constant 0 : index
    %1 = vector.load %arg2[%c0_1, %c0_2] : memref<16x128xf32, #tpu.memory_space<vmem>>, vector<16x128xf32>
    %cst = arith.constant dense<0.000000e+00> : vector<128x128xf32>
    %2 = tpu.matmul %0, %1, %cst {dimension_numbers = #tpu.dot_dimension_numbers<[1], [0], [0], [1], [0, 0, 1, 1], [], []>} : vector<128x16xf32>, vector<16x128xf32>, vector<128x128xf32> -> vector<128x128xf32>
    %c0_3 = arith.constant 0 : index
    %c0_4 = arith.constant 0 : index
    %3 = vector.load %arg3[%c0_3, %c0_4] : memref<1x128xf32, #tpu.memory_space<vmem>>, vector<1x128xf32>
    %4 = vector.broadcast %3 : vector<1x128xf32> to vector<128x128xf32>
    %5 = arith.addf %2, %4 : vector<128x128xf32>
    %cst_5 = arith.constant 0.00999999977 : f32
    %6 = vector.broadcast %cst_5 : f32 to vector<128x128xf32>
    %7 = arith.mulf %6, %5 : vector<128x128xf32>
    %8 = arith.maximumf %5, %7 : vector<128x128xf32>
    %c0_6 = arith.constant 0 : index
    %c0_7 = arith.constant 0 : index
    %9 = vector.load %arg4[%c0_6, %c0_7] : memref<128x128xf32, #tpu.memory_space<vmem>>, vector<128x128xf32>
    %cst_8 = arith.constant dense<0.000000e+00> : vector<128x128xf32>
    %10 = tpu.matmul %8, %9, %cst_8 {dimension_numbers = #tpu.dot_dimension_numbers<[1], [0], [0], [1], [0, 0, 1, 1], [], []>} : vector<128x128xf32>, vector<128x128xf32>, vector<128x128xf32> -> vector<128x128xf32>
    %c0_9 = arith.constant 0 : index
    %c0_10 = arith.constant 0 : index
    %11 = vector.load %arg5[%c0_9, %c0_10] : memref<1x128xf32, #tpu.memory_space<vmem>>, vector<1x128xf32>
    %12 = vector.broadcast %11 : vector<1x128xf32> to vector<128x128xf32>
    %13 = arith.addf %10, %12 : vector<128x128xf32>
    %cst_11 = arith.constant 0.00999999977 : f32
    %14 = vector.broadcast %cst_11 : f32 to vector<128x128xf32>
    %15 = arith.mulf %14, %13 : vector<128x128xf32>
    %16 = arith.maximumf %13, %15 : vector<128x128xf32>
    %c0_12 = arith.constant 0 : index
    %c0_13 = arith.constant 0 : index
    %17 = vector.load %arg6[%c0_12, %c0_13] : memref<128x128xf32, #tpu.memory_space<vmem>>, vector<128x128xf32>
    %cst_14 = arith.constant dense<0.000000e+00> : vector<128x128xf32>
    %18 = tpu.matmul %16, %17, %cst_14 {dimension_numbers = #tpu.dot_dimension_numbers<[1], [0], [0], [1], [0, 0, 1, 1], [], []>} : vector<128x128xf32>, vector<128x128xf32>, vector<128x128xf32> -> vector<128x128xf32>
    %c0_15 = arith.constant 0 : index
    %c0_16 = arith.constant 0 : index
    %19 = vector.load %arg7[%c0_15, %c0_16] : memref<1x128xf32, #tpu.memory_space<vmem>>, vector<1x128xf32>
    %20 = vector.broadcast %19 : vector<1x128xf32> to vector<128x128xf32>
    %21 = arith.addf %18, %20 : vector<128x128xf32>
    %cst_17 = arith.constant 0.00999999977 : f32
    %22 = vector.broadcast %cst_17 : f32 to vector<128x128xf32>
    %23 = arith.mulf %22, %21 : vector<128x128xf32>
    %24 = arith.maximumf %21, %23 : vector<128x128xf32>
    %c0_18 = arith.constant 0 : index
    %c0_19 = arith.constant 0 : index
    %25 = vector.load %arg8[%c0_18, %c0_19] : memref<3x128xf32, #tpu.memory_space<vmem>>, vector<3x128xf32>
    %cst_20 = arith.constant dense<0.000000e+00> : vector<3x128xf32>
    %26 = tpu.matmul %25, %24, %cst_20 {dimension_numbers = #tpu.dot_dimension_numbers<[1], [1], [0], [0], [0, 0, 1, 0], [], []>} : vector<3x128xf32>, vector<128x128xf32>, vector<3x128xf32> -> vector<3x128xf32>
    %c0_21 = arith.constant 0 : index
    %c0_22 = arith.constant 0 : index
    %27 = vector.load %arg9[%c0_21, %c0_22] : memref<3x1xf32, #tpu.memory_space<vmem>>, vector<3x1xf32>
    %28 = vector.broadcast %27 : vector<3x1xf32> to vector<3x128xf32>
    %29 = arith.addf %26, %28 : vector<3x128xf32>
    %c0_23 = arith.constant 0 : index
    %c0_24 = arith.constant 0 : index
    %30 = vector.load %arg10[%c0_23, %c0_24] : memref<3x128xf32, #tpu.memory_space<vmem>>, vector<3x128xf32>
    tpu.vector_store %arg10[%c0_23, %c0_24], %29 {strides = array<i32>} : memref<3x128xf32, #tpu.memory_space<vmem>>, vector<3x128xf32>,
    return
  }
  func.func @transform_0(%arg0: i32) -> (i32, i32) {
    %c0_i32 = arith.constant 0 : i32
    %c0_i32_0 = arith.constant 0 : i32
    return %arg0, %c0_i32 : i32, i32
  }
  func.func @transform_1(%arg0: i32) -> (i32, i32) {
    %c0_i32 = arith.constant 0 : i32
    %c0_i32_0 = arith.constant 0 : i32
    %c0_i32_1 = arith.constant 0 : i32
    return %c0_i32, %c0_i32_0 : i32, i32
  }
  func.func @transform_2(%arg0: i32) -> (i32, i32) {
    %c0_i32 = arith.constant 0 : i32
    %c0_i32_0 = arith.constant 0 : i32
    %c0_i32_1 = arith.constant 0 : i32
    return %c0_i32, %c0_i32_0 : i32, i32
  }
  func.func @transform_3(%arg0: i32) -> (i32, i32) {
    %c0_i32 = arith.constant 0 : i32
    %c0_i32_0 = arith.constant 0 : i32
    %c0_i32_1 = arith.constant 0 : i32
    return %c0_i32, %c0_i32_0 : i32, i32
  }
  func.func @transform_4(%arg0: i32) -> (i32, i32) {
    %c0_i32 = arith.constant 0 : i32
    %c0_i32_0 = arith.constant 0 : i32
    %c0_i32_1 = arith.constant 0 : i32
    return %c0_i32, %c0_i32_0 : i32, i32
  }
  func.func @transform_5(%arg0: i32) -> (i32, i32) {
    %c0_i32 = arith.constant 0 : i32
    %c0_i32_0 = arith.constant 0 : i32
    %c0_i32_1 = arith.constant 0 : i32
    return %c0_i32, %c0_i32_0 : i32, i32
  }
  func.func @transform_6(%arg0: i32) -> (i32, i32) {
    %c0_i32 = arith.constant 0 : i32
    %c0_i32_0 = arith.constant 0 : i32
    %c0_i32_1 = arith.constant 0 : i32
    return %c0_i32, %c0_i32_0 : i32, i32
  }
  func.func @transform_7(%arg0: i32) -> (i32, i32) {
    %c0_i32 = arith.constant 0 : i32
    %c0_i32_0 = arith.constant 0 : i32
    %c0_i32_1 = arith.constant 0 : i32
    return %c0_i32, %c0_i32_0 : i32, i32
  }
  func.func @transform_8(%arg0: i32) -> (i32, i32) {
    %c0_i32 = arith.constant 0 : i32
    %c0_i32_0 = arith.constant 0 : i32
    %c0_i32_1 = arith.constant 0 : i32
    return %c0_i32, %c0_i32_0 : i32, i32
  }
  func.func @transform_9(%arg0: i32) -> (i32, i32) {
    %c0_i32 = arith.constant 0 : i32
    %c0_i32_0 = arith.constant 0 : i32
    return %c0_i32, %arg0 : i32, i32
  }
}

</mosaic_0001>

<bundles_post_ra>
// kernel: tpu_custom_call.1
= control target key start
LH: loop header
LB: loop body
LE: loop exit
PB: predicated region body
PF: predicated region fallthrough
CT: control target
= control target key end

     0   :  { %14 = vsyncpa [#allocation3], 0  ;;  %s1924_s0 = inlined_call_operand.vmem [shape: f32[256,16], index: 0, kind: input, shape index: {}]   ;;  %s1925_s1 = inlined_call_operand.vmem [shape: f32[16,128], index: 1, kind: input, shape index: {}]   ;;  %s1926_s2 = inlined_call_operand.vmem [shape: f32[1,128], index: 2, kind: input, shape index: {}]   ;;  %s1927_s3 = inlined_call_operand.vmem [shape: f32[128,128], index: 3, kind: input, shape index: {}]   ;;  %s1928_s4 = inlined_call_operand.vmem [shape: f32[1,128], index: 4, kind: input, shape index: {}]   ;;  %s1929_s5 = inlined_call_operand.vmem [shape: f32[128,128], index: 5, kind: input, shape index: {}]   ;;  %s1930_s6 = inlined_call_operand.vmem [shape: f32[1,128], index: 6, kind: input, shape index: {}]   ;;  %s1931_s7 = inlined_call_operand.vmem [shape: f32[3,128], index: 7, kind: input, shape index: {}]   ;;  %s1932_s8 = inlined_call_operand.vmem [shape: f32[3,1], index: 8, kind: input, shape index: {}]   ;;  %s1933_s9 = inlined_call_operand.hbm [shape: f32[3,256], index: 9, kind: output, shape index: {}]  }
   0x1   :  { %16 = vsyncpa [#allocation3 + $0x1], 0  ;;  %s1598_s30 = smov 0   ;;  %s1600_s10 = smov 0  }
   0x2   :  { %s1602_s11 = smov 0   ;;  %s1604_s12 = smov 0  }
   0x3 LB: > { %s1619_s13 = sadd.s32 4294967295, %s1542_s12   ;;  %s1135_s14 = sadd.s32 4294967294, %s1542_s12   ;;  %s1542_s12 = sphi %s1604_s12, %s1939_s12   ;;  %s1538_s11 = sphi %s1602_s11, %s1938_s11   ;;  %s1534_s10 = sphi %s1600_s10, %s1937_s10   ;;  %s1530_s30 = sphi %s1598_s30, %s1936_s30  }
   0x4   : > { %s1623_s15 = sadd.s32 1, %s1542_s12   ;;  %s223_s16 = sadd.s32 1, %s1538_s11 }
   0x5   : > { %s220_s17 = ssub.s32 %s1542_s12, %s1623_s15  ;;  %p233_p0 = scmp.ne.s32.totalorder %s1538_s11, %s1534_s10 }
   0x6   : > { %p221_p1 = scmp.eq.s32.totalorder %s220_s17, 0  ;;  %p234_p2 = scmp.eq.s32.totalorder %s1619_s13, 1 }
   0x7   : > { %p239_p3 = scmp.ne.s32.totalorder %s1534_s10, %s1530_s30  ;;  %p240_p4 = scmp.eq.s32.totalorder %s1135_s14, 1 }
   0x8   : > { %s1634_s18 = scalar_select %p221_p1, %s1538_s11, %s223_s16  }
   0x9   : > { %p1636_p5 = por %p234_p2, %p233_p0  ;;  %p1640_p6 = por %p240_p4, %p239_p3 }
   0xa   : > { %p1138_p7 = scmp.ge.s32.totalorder %s1542_s12, 1  ;;  %p291_p8 = scmp.lt.s32.totalorder %s1542_s12, 3 }
   0xc   : > { %p292_p9 = pnand %p1138_p7, %p291_p8 }
   0xd   : > { %s1140_s25 = sshll.u32 (!%p292_p9), %s1619_s13, 4  ;;  %s324_s21 = sand.u32 (!%p292_p9), 1, %s1534_s10  }
   0xe   : > { %295 = sbr.rel (%p292_p9) target bundleno = 927 (0x39f), region = 56  ;;  %p328_p10 = scmp.lt.s32.totalorder (!%p292_p9), %s1140_s25, 31 }
   0xf   : > { %s1063_s29 = scalar_lea.sflag (!%p292_p9), [#allocation3], %s324_s21  ;;  %s1547_s16 = smov (!%p292_p9), [#allocation2]  }
  0x13   : > { %v350_v0 = vld [vmem:[%s1925_s1 + $0x8] sm:$0xff]  ;;  %v349_v1 = vld [vmem:[%s1925_s1] sm:$0xff]  ;;  %v599_v2 = vld [vmem:[%s1927_s3 + $0x78] sm:$0xff]  ;;  %s1941_s25 = smov (!%p328_p10, %s1140_s25), 31  ;;  %vm358_vm0 = vcmask 130048   ;;  %vm1545_vm1 = vmmov 0  }
  0x14   : > { %1264 = vmatprep.subr.mxu0 %v350_v0  ;;  %1292 = vmatprep.subr.mxu1 %v599_v2  ;;  %v598_v3 = vld [vmem:[%s1927_s3 + $0x70] sm:$0xff]  ;;  %v597_v4 = vld [vmem:[%s1927_s3 + $0x68] sm:$0xff]  ;;  %v596_v5 = vld [vmem:[%s1927_s3 + $0x60] sm:$0xff]  ;;  %s1141_s22 = sshll.u32 %s1941_s25, 3 }
  0x15   : > { %1265 = vmatpush3.msra.mxu0 %v350_v0  ;;  %1293 = vmatpush3.msra.mxu1 %v599_v2  ;;  %s1668_s26 = scalar_lea.vmem %s1924_s0, %s1141_s22  ;;  %v595_v6 = vld [vmem:[%s1927_s3 + $0x58] sm:$0xff]  ;;  %v594_v10 = vld [vmem:[%s1927_s3 + $0x50] sm:$0xff]  ;;  %v593_v12 = vld [vmem:[%s1927_s3 + $0x48] sm:$0xff]  ;;  %s1139_s22 = sshll.u32 %s324_s21, 2 }
  0x16   : > { %1266 = vmatprep.subr.mxu0 %v349_v1  ;;  %1294 = vmatprep.subr.mxu1 %v598_v3  ;;  %v333_v7 = vld [vmem:[%s1668_s26] sm:$0xff]  ;;  %v334_v8 = vld [vmem:[%s1668_s26 + $0x8] sm:$0xff]  ;;  %v335_v9 = vld [vmem:[%s1668_s26 + $0x10] sm:$0xff]  ;;  %s326_s23 = scalar_lea.vmem [#allocation2], %s1139_s22 }
  0x17   : > { %1267 = vmatpush3.msra.mxu0 %v349_v1  ;;  %1295 = vmatpush3.msra.mxu1 %v598_v3  ;;  %v336_v11 = vld [vmem:[%s1668_s26 + $0x18] sm:$0xff]  ;;  %v337_v13 = vld [vmem:[%s1668_s26 + $0x20] sm:$0xff]  ;;  %v338_v15 = vld [vmem:[%s1668_s26 + $0x28] sm:$0xff]  ;;  %s1076_s24 = sshll.u32 %s326_s23, 4  ;;  %s1077_s24 = int_to_ptr.vmem [resolvable:$true] %s1076_s24 }
  0x18   : > { %1296 = vmatprep.subr.mxu1 %v597_v4  ;;  %1268 = vmatprep.mubr.msk.f32.mxu0 %vm358_vm0, %v333_v7  ;;  %v592_v14 = vld [vmem:[%s1927_s3 + $0x40] sm:$0xff]  ;;  %v591_v16 = vld [vmem:[%s1927_s3 + $0x38] sm:$0xff]  ;;  %v339_v17 = vld [vmem:[%s1668_s26 + $0x30] sm:$0xff]  ;;  %s1482_s14 = scalar_lea.vmem %s1077_s24, 64 }
  0x19   : > { %1297 = vmatpush3.msra.mxu1 %v597_v4  ;;  %1269 = vmatmul.mubr.msk.f32.vlgmr.msra.gmra.mxu0 %vm358_vm0, %v334_v8  ;;  %v590_v18 = vld [vmem:[%s1927_s3 + $0x30] sm:$0xff]  ;;  %v340_v19 = vld [vmem:[%s1668_s26 + $0x38] sm:$0xff]  ;;  %v589_v20 = vld [vmem:[%s1927_s3 + $0x28] sm:$0xff]  ;;  %p1483_p11 = scmp.ne.s32.totalorder %s1077_s24, %s1482_s14 }
  0x1a   : > { %1298 = vmatprep.subr.mxu1 %v596_v5  ;;  %1271 = vmatprep.mubr.msk.f32.mxu0 %vm358_vm0, %v335_v9  ;;  %v341_v21 = vld [vmem:[%s1668_s26 + $0x40] sm:$0xff]  ;;  %v342_v22 = vld [vmem:[%s1668_s26 + $0x48] sm:$0xff]  ;;  %v343_v23 = vld [vmem:[%s1668_s26 + $0x50] sm:$0xff] }
  0x1b   : > { %1299 = vmatpush3.msra.mxu1 %v596_v5  ;;  %v344_v24 = vld [vmem:[%s1668_s26 + $0x58] sm:$0xff]  ;;  %v345_v25 = vld [vmem:[%s1668_s26 + $0x60] sm:$0xff]  ;;  %v346_v26 = vld [vmem:[%s1668_s26 + $0x68] sm:$0xff]  ;;  %p1484_p12 = pnand %p1483_p11, %p1636_p5 }
  0x1c   : > { %1300 = vmatprep.subr.mxu1 %v595_v6  ;;  %v347_v27 = vld [vmem:[%s1668_s26 + $0x70] sm:$0xff]  ;;  %v348_v28 = vld [vmem:[%s1668_s26 + $0x78] sm:$0xff]  ;;  %v588_v29 = vld [vmem:[%s1927_s3 + $0x20] sm:$0xff]  ;;  %s1162_s26 = sshll.u32 %s1619_s13, 6  ;;  %s1486_s13 = sshll.u32 %s1547_s16, 4  ;;  %s1487_s13 = int_to_ptr.vmem [resolvable:$false] %s1486_s13 }
  0x1d   : > { %1301 = vmatpush3.msra.mxu1 %v595_v6  ;;  %1272 = vmatmul.mubr.msk.f32.gmra.mxu0 %vm358_vm0, %v336_v11  ;;  %v587_v30 = vld [vmem:[%s1927_s3 + $0x18] sm:$0xff]  ;;  %v586_v31 = vld [vmem:[%s1927_s3 + $0x10] sm:$0xff]  ;;  %v585_v32 = vld [vmem:[%s1927_s3 + $0x8] sm:$0xff]  ;;  %s1889_s25 = scalar_lea.hbm %s1933_s9, %s1162_s26  ;;  %p1485_p13 = pneg %p1484_p12 }
  0x1e   : > { %1302 = vmatprep.subr.mxu1 %v594_v10  ;;  %1274 = vmatprep.mubr.msk.f32.mxu0 %vm358_vm0, %v337_v13  ;;  %v584_v33 = vld [vmem:[%s1927_s3] sm:$0xff]  ;;  %v799_v34 = vld [vmem:[%s1929_s5 + $0x78] sm:$0xff]  ;;  %v798_v35 = vld [vmem:[%s1929_s5 + $0x70] sm:$0xff]  ;;  %s1488_s17 = scalar_lea.vmem %s1487_s13, 128  ;;  %p1489_p0 = scmp.lt.s32.totalorder %s1077_s24, %s1487_s13 }
  0x1f   : > { %1303 = vmatpush3.msra.mxu1 %v594_v10  ;;  %1348 = vmatprep.subr.mxu0 %v799_v34  ;;  %v797_v36 = vld [vmem:[%s1929_s5 + $0x68] sm:$0xff]  ;;  %v796_v37 = vld [vmem:[%s1929_s5 + $0x60] sm:$0xff]  ;;  %v795_v38 = vld [vmem:[%s1929_s5 + $0x58] sm:$0xff]  ;;  %p1490_p1 = scmp.lt.s32.totalorder %s1488_s17, %s1482_s14 }
  0x20   : > { %1304 = vmatprep.subr.mxu1 %v593_v12  ;;  %1349 = vmatpush3.msra.mxu0 %v799_v34  ;;  %v794_v39 = vld [vmem:[%s1929_s5 + $0x50] sm:$0xff]  ;;  %v793_v40 = vld [vmem:[%s1929_s5 + $0x48] sm:$0xff]  ;;  %v792_v41 = vld [vmem:[%s1929_s5 + $0x40] sm:$0xff] }
  0x21   : > { %1305 = vmatpush3.msra.mxu1 %v593_v12  ;;  %1275 = vmatmul.mubr.msk.f32.gmra.mxu0 %vm358_vm0, %v338_v15  ;;  %v791_v42 = vld [vmem:[%s1929_s5 + $0x38] sm:$0xff]  ;;  %v790_v43 = vld [vmem:[%s1929_s5 + $0x30] sm:$0xff]  ;;  %v789_v44 = vld [vmem:[%s1929_s5 + $0x28] sm:$0xff]  ;;  %p1491_p2 = por %p1490_p1, %p1489_p0 }
  0x22   : > { %1306 = vmatprep.subr.mxu1 %v592_v14  ;;  %1277 = vmatprep.mubr.msk.f32.mxu0 %vm358_vm0, %v339_v17  ;;  %v788_v45 = vld [vmem:[%s1929_s5 + $0x20] sm:$0xff] }
  0x23   : > { %1307 = vmatpush3.msra.mxu1 %v592_v14  ;;  %1350 = vmatprep.subr.mxu0 %v798_v35  ;;  %v1777_v46 = vld [vmem:[%s1926_s2] ss:$0 sm:$0xff]  ;;  %p1492_p3 = pnand %p1491_p2, %p1485_p13 }
  0x24   : > { %1308 = vmatprep.subr.mxu1 %v591_v16  ;;  %1351 = vmatpush3.msra.mxu0 %v798_v35 }
  0x25   : > { %1309 = vmatpush3.msra.mxu1 %v591_v16  ;;  %1278 = vmatmul.mubr.msk.f32.gmra.mxu0 %vm358_vm0, %v340_v19 }
  0x26   : > { %1310 = vmatprep.subr.mxu1 %v590_v18  ;;  %1280 = vmatprep.mubr.msk.f32.mxu0 %vm358_vm0, %v341_v21 }
  0x27   : > { %1311 = vmatpush3.msra.mxu1 %v590_v18  ;;  %1352 = vmatprep.subr.mxu0 %v797_v36 }
  0x28   : > { %1312 = vmatprep.subr.mxu1 %v589_v20  ;;  %1353 = vmatpush3.msra.mxu0 %v797_v36 }
  0x29   : > { %1313 = vmatpush3.msra.mxu1 %v589_v20  ;;  %1281 = vmatmul.mubr.msk.f32.gmra.mxu0 %vm358_vm0, %v342_v22 }
  0x2a   : > { %1283 = vmatprep.mubr.msk.f32.mxu0 %vm358_vm0, %v343_v23  ;;  %1314 = vmatprep.subr.mxu1 %v588_v29 }
  0x2b   : > { %1315 = vmatpush3.msra.mxu1 %v588_v29  ;;  %1354 = vmatprep.subr.mxu0 %v796_v37 }
  0x2c   : > { %1316 = vmatprep.subr.mxu1 %v587_v30  ;;  %1355 = vmatpush3.msra.mxu0 %v796_v37 }
  0x2d   : > { %1284 = vmatmul.mubr.msk.f32.gmra.mxu0 %vm358_vm0, %v344_v24  ;;  %1317 = vmatpush3.msra.mxu1 %v587_v30 }
  0x2e   : > { %1286 = vmatprep.mubr.msk.f32.mxu0 %vm358_vm0, %v345_v25  ;;  %1318 = vmatprep.subr.mxu1 %v586_v31 }
  0x2f   : > { %1319 = vmatpush3.msra.mxu1 %v586_v31  ;;  %1356 = vmatprep.subr.mxu0 %v795_v38 }
  0x30   : > { %1320 = vmatprep.subr.mxu1 %v585_v32  ;;  %1357 = vmatpush3.msra.mxu0 %v795_v38 }
  0x31   : > { %1287 = vmatmul.mubr.msk.f32.gmra.mxu0 %vm358_vm0, %v346_v26  ;;  %1321 = vmatpush3.msra.mxu1 %v585_v32 }
  0x32   : > { %1289 = vmatprep.mubr.msk.f32.mxu0 %vm358_vm0, %v347_v27  ;;  %1322 = vmatprep.subr.mxu1 %v584_v33 }
  0x33   : > { %1323 = vmatpush3.msra.mxu1 %v584_v33  ;;  %1358 = vmatprep.subr.mxu0 %v794_v39 }
  0x34   : > { %1359 = vmatpush3.msra.mxu0 %v794_v39 }
  0x35   : > { %1290 = vmatmul.mubr.msk.f32.gmra.mxu0 %vm358_vm0, %v348_v28  ;;  %1360 = vmatprep.subr.mxu0 %v793_v40 }
  0x36   : > { %1361 = vmatpush3.msra.mxu0 %v793_v40 }
  0x37   : > { %1362 = vmatprep.subr.mxu0 %v792_v41 }
  0x38   : > { %1363 = vmatpush3.msra.mxu0 %v792_v41 }
  0x39   : > { %1364 = vmatprep.subr.mxu0 %v791_v42 }
  0x3a   : > { %1365 = vmatpush3.msra.mxu0 %v791_v42 }
  0x3b   : > { %1366 = vmatprep.subr.mxu0 %v790_v43 }
  0x3c   : > { %1367 = vmatpush3.msra.mxu0 %v790_v43 }
  0x3d   : > { %1368 = vmatprep.subr.mxu0 %v789_v44 }
  0x3e   : > { %1369 = vmatpush3.msra.mxu0 %v789_v44 }
  0x3f   : > { %1370 = vmatprep.subr.mxu0 %v788_v45 }
  0x40   : > { %1371 = vmatpush3.msra.mxu0 %v788_v45 }
  0xd9   : > { %v1270_v47 = vpop.f32.mrf.mxu0 }
  0xda   : > { %v479_v48 = vadd.f32 %v1270_v47, %v1777_v46 }
  0xdb   : > { %v473_v49 = vpop.f32.mrf.mxu0 }
  0xdc   : > { %v474_v50 = vadd.f32 %v1777_v46, %v473_v49  ;;  %v553_v51 = vmul.f32 0.01, %v479_v48  ;;  %v786_v49 = vld [vmem:[%s1929_s5 + $0x10] sm:$0xff] }
  0xdd   : > { %v1273_v52 = vpop.f32.mrf.mxu0 }
  0xde   : > { %v489_v53 = vadd.f32 %v1273_v52, %v1777_v46  ;;  %v552_v54 = vmul.f32 0.01, %v474_v50  ;;  %v569_v58 = vmax.f32 %v479_v48, %v553_v51  ;;  %v787_v48 = vld [vmem:[%s1929_s5 + $0x18] sm:$0xff]  ;;  %v1810_v51 = vld [vmem:[%s1928_s4] ss:$0 sm:$0xff] }
  0xdf   : > { %v483_v55 = vpop.f32.mrf.mxu0  ;;  %1372 = vmatprep.subr.mxu0 %v787_v48 }
  0xe0   : > { %v484_v56 = vadd.f32 %v1777_v46, %v483_v55  ;;  %v568_v57 = vmax.f32 %v474_v50, %v552_v54  ;;  %v555_v59 = vmul.f32 0.01, %v489_v53  ;;  %1373 = vmatpush3.msra.mxu0 %v787_v48  ;;  %v784_v50 = vld [vmem:[%s1929_s5] sm:$0xff] }
  0xe1   : > { %v1276_v60 = vpop.f32.mrf.mxu0  ;;  %1374 = vmatprep.subr.mxu0 %v786_v49 }
  0xe2   : > { %v554_v61 = vmul.f32 0.01, %v484_v56  ;;  %v499_v62 = vadd.f32 %v1276_v60, %v1777_v46  ;;  %1324 = vmatprep.mubr.f32.mxu1 %v568_v57  ;;  %v571_v2 = vmax.f32 %v489_v53, %v555_v59  ;;  %1375 = vmatpush3.msra.mxu0 %v786_v49 }
  0xe3   : > { %v493_v63 = vpop.f32.mrf.mxu0  ;;  %1325 = vmatmul.mubr.f32.vlgmr.msra.gmra.mxu1 %v569_v58 }
  0xe4   : > { %v570_v0 = vmax.f32 %v484_v56, %v554_v61  ;;  %v494_v1 = vadd.f32 %v1777_v46, %v493_v63  ;;  %v557_v3 = vmul.f32 0.01, %v499_v62 }
  0xe5   : > { %v1279_v4 = vpop.f32.mrf.mxu0 }
  0xe6   : > { %v556_v5 = vmul.f32 0.01, %v494_v1  ;;  %v509_v6 = vadd.f32 %v1279_v4, %v1777_v46  ;;  %1327 = vmatprep.mubr.f32.mxu1 %v570_v0  ;;  %v573_v10 = vmax.f32 %v499_v62, %v557_v3 }
  0xe7   : > { %v503_v7 = vpop.f32.mrf.mxu0  ;;  %1328 = vmatmul.mubr.f32.gmra.mxu1 %v571_v2 }
  0xe8   : > { %v572_v8 = vmax.f32 %v494_v1, %v556_v5  ;;  %v504_v9 = vadd.f32 %v1777_v46, %v503_v7  ;;  %v559_v11 = vmul.f32 0.01, %v509_v6 }
  0xe9   : > { %v1282_v12 = vpop.f32.mrf.mxu0 }
  0xea   : > { %v558_v13 = vmul.f32 0.01, %v504_v9  ;;  %v519_v14 = vadd.f32 %v1282_v12, %v1777_v46  ;;  %1330 = vmatprep.mubr.f32.mxu1 %v572_v8  ;;  %v575_v18 = vmax.f32 %v509_v6, %v559_v11 }
  0xeb   : > { %v513_v15 = vpop.f32.mrf.mxu0  ;;  %1331 = vmatmul.mubr.f32.gmra.mxu1 %v573_v10 }
  0xec   : > { %v574_v16 = vmax.f32 %v504_v9, %v558_v13  ;;  %v514_v17 = vadd.f32 %v1777_v46, %v513_v15  ;;  %v561_v19 = vmul.f32 0.01, %v519_v14 }
  0xed   : > { %v1285_v20 = vpop.f32.mrf.mxu0 }
  0xee   : > { %v560_v21 = vmul.f32 0.01, %v514_v17  ;;  %v529_v22 = vadd.f32 %v1285_v20, %v1777_v46  ;;  %1333 = vmatprep.mubr.f32.mxu1 %v574_v16  ;;  %v577_v26 = vmax.f32 %v519_v14, %v561_v19 }
  0xef   : > { %v523_v23 = vpop.f32.mrf.mxu0  ;;  %1334 = vmatmul.mubr.f32.gmra.mxu1 %v575_v18 }
  0xf0   : > { %v576_v24 = vmax.f32 %v514_v17, %v560_v21  ;;  %v524_v25 = vadd.f32 %v1777_v46, %v523_v23  ;;  %v563_v27 = vmul.f32 0.01, %v529_v22 }
  0xf1   : > { %v1288_v28 = vpop.f32.mrf.mxu0 }
  0xf2   : > { %v562_v29 = vmul.f32 0.01, %v524_v25  ;;  %v539_v30 = vadd.f32 %v1288_v28, %v1777_v46  ;;  %1336 = vmatprep.mubr.f32.mxu1 %v576_v24  ;;  %v579_v34 = vmax.f32 %v529_v22, %v563_v27 }
  0xf3   : > { %v533_v31 = vpop.f32.mrf.mxu0  ;;  %1337 = vmatmul.mubr.f32.gmra.mxu1 %v577_v26 }
  0xf4   : > { %v578_v32 = vmax.f32 %v524_v25, %v562_v29  ;;  %v534_v33 = vadd.f32 %v1777_v46, %v533_v31  ;;  %v565_v35 = vmul.f32 0.01, %v539_v30 }
  0xf5   : > { %v1291_v36 = vpop.f32.mrf.mxu0 }
  0xf6   : > { %v564_v37 = vmul.f32 0.01, %v534_v33  ;;  %v549_v38 = vadd.f32 %v1291_v36, %v1777_v46  ;;  %1339 = vmatprep.mubr.f32.mxu1 %v578_v32  ;;  %v581_v42 = vmax.f32 %v539_v30, %v565_v35 }
  0xf7   : > { %v543_v39 = vpop.f32.mrf.mxu0  ;;  %1340 = vmatmul.mubr.f32.gmra.mxu1 %v579_v34 }
  0xf8   : > { %v580_v40 = vmax.f32 %v534_v33, %v564_v37  ;;  %v544_v41 = vadd.f32 %v1777_v46, %v543_v39  ;;  %v567_v43 = vmul.f32 0.01, %v549_v38  ;;  %v785_v46 = vld [vmem:[%s1929_s5 + $0x8] sm:$0xff] }
  0xf9   : > { %1376 = vmatprep.subr.mxu0 %v785_v46 }
  0xfa   : > { %v566_v44 = vmul.f32 0.01, %v544_v41  ;;  %1342 = vmatprep.mubr.f32.mxu1 %v580_v40  ;;  %v583_v47 = vmax.f32 %v549_v38, %v567_v43  ;;  %1377 = vmatpush3.msra.mxu0 %v785_v46 }
  0xfb   : > { %1343 = vmatmul.mubr.f32.gmra.mxu1 %v581_v42  ;;  %1378 = vmatprep.subr.mxu0 %v784_v50 }
  0xfc   : > { %v582_v45 = vmax.f32 %v544_v41, %v566_v44  ;;  %1379 = vmatpush3.msra.mxu0 %v784_v50 }
  0xfe   : > { %1345 = vmatprep.mubr.f32.mxu1 %v582_v45 }
  0xff   : > { %1346 = vmatmul.mubr.f32.gmra.mxu1 %v583_v47 }
 0x1a3   : > { %v1326_v52 = vpop.f32.mrf.mxu1 }
 0x1a4   : > { %v679_v53 = vadd.f32 %v1326_v52, %v1810_v51 }
 0x1a5   : > { %v673_v54 = vpop.f32.mrf.mxu1 }
 0x1a6   : > { %v674_v55 = vadd.f32 %v1810_v51, %v673_v54  ;;  %v753_v56 = vmul.f32 0.01, %v679_v53  ;;  %v985_v54 = vld [vmem:[%s1932_s8] sm:$0x7] }
 0x1a7   : > { %v1329_v57 = vpop.f32.mrf.mxu1 }
 0x1a8   : > { %v752_v58 = vmul.f32 0.01, %v674_v55  ;;  %v689_v59 = vadd.f32 %v1329_v57, %v1810_v51  ;;  %v769_v63 = vmax.f32 %v679_v53, %v753_v56  ;;  %v1544_v53 = vmov 0.0  }
 0x1a9   : > { %v683_v60 = vpop.f32.mrf.mxu1  ;;  %1404 = vmatprep.subr.mxu1 %v1544_v53  ;;  %1436 = vmatprep.mubr.msk.f32.mxu1 %vm1545_vm1, %v1544_v53 }
 0x1aa   : > { %v768_v61 = vmax.f32 %v674_v55, %v752_v58  ;;  %v684_v62 = vadd.f32 %v1810_v51, %v683_v60  ;;  %v755_v0 = vmul.f32 0.01, %v689_v59 }
 0x1ab   : > { %v1332_v1 = vpop.f32.mrf.mxu1 }
 0x1ac   : > { %v754_v2 = vmul.f32 0.01, %v684_v62  ;;  %v699_v3 = vadd.f32 %v1332_v1, %v1810_v51  ;;  %1380 = vmatprep.mubr.f32.mxu0 %v768_v61  ;;  %v771_v7 = vmax.f32 %v689_v59, %v755_v0 }
 0x1ad   : > { %v693_v4 = vpop.f32.mrf.mxu1  ;;  %1381 = vmatmul.mubr.f32.vlgmr.msra.gmra.mxu0 %v769_v63 }
 0x1ae   : > { %v770_v5 = vmax.f32 %v684_v62, %v754_v2  ;;  %v694_v6 = vadd.f32 %v1810_v51, %v693_v4  ;;  %v757_v8 = vmul.f32 0.01, %v699_v3 }
 0x1af   : > { %v1335_v9 = vpop.f32.mrf.mxu1 }
 0x1b0   : > { %v756_v10 = vmul.f32 0.01, %v694_v6  ;;  %v709_v11 = vadd.f32 %v1335_v9, %v1810_v51  ;;  %1383 = vmatprep.mubr.f32.mxu0 %v770_v5  ;;  %v773_v15 = vmax.f32 %v699_v3, %v757_v8  ;;  %v1844_v5 = vld [vmem:[%s1930_s6] ss:$0 sm:$0xff] }
 0x1b1   : > { %v703_v12 = vpop.f32.mrf.mxu1  ;;  %1384 = vmatmul.mubr.f32.gmra.mxu0 %v771_v7 }
 0x1b2   : > { %v772_v13 = vmax.f32 %v694_v6, %v756_v10  ;;  %v704_v14 = vadd.f32 %v1810_v51, %v703_v12  ;;  %v759_v16 = vmul.f32 0.01, %v709_v11 }
 0x1b3   : > { %v1338_v17 = vpop.f32.mrf.mxu1 }
 0x1b4   : > { %v758_v18 = vmul.f32 0.01, %v704_v14  ;;  %v719_v19 = vadd.f32 %v1338_v17, %v1810_v51  ;;  %1386 = vmatprep.mubr.f32.mxu0 %v772_v13  ;;  %v775_v23 = vmax.f32 %v709_v11, %v759_v16 }
 0x1b5   : > { %v713_v20 = vpop.f32.mrf.mxu1  ;;  %1387 = vmatmul.mubr.f32.gmra.mxu0 %v773_v15 }
 0x1b6   : > { %v774_v21 = vmax.f32 %v704_v14, %v758_v18  ;;  %v714_v22 = vadd.f32 %v1810_v51, %v713_v20  ;;  %v761_v24 = vmul.f32 0.01, %v719_v19 }
 0x1b7   : > { %v1341_v25 = vpop.f32.mrf.mxu1 }
 0x1b8   : > { %v760_v26 = vmul.f32 0.01, %v714_v22  ;;  %v729_v27 = vadd.f32 %v1341_v25, %v1810_v51  ;;  %1389 = vmatprep.mubr.f32.mxu0 %v774_v21  ;;  %v777_v31 = vmax.f32 %v719_v19, %v761_v24 }
 0x1b9   : > { %v723_v28 = vpop.f32.mrf.mxu1  ;;  %1390 = vmatmul.mubr.f32.gmra.mxu0 %v775_v23 }
 0x1ba   : > { %v776_v29 = vmax.f32 %v714_v22, %v760_v26  ;;  %v724_v30 = vadd.f32 %v1810_v51, %v723_v28  ;;  %v763_v32 = vmul.f32 0.01, %v729_v27 }
 0x1bb   : > { %v1344_v33 = vpop.f32.mrf.mxu1 }
 0x1bc   : > { %v762_v34 = vmul.f32 0.01, %v724_v30  ;;  %v739_v35 = vadd.f32 %v1344_v33, %v1810_v51  ;;  %1392 = vmatprep.mubr.f32.mxu0 %v776_v29  ;;  %v779_v39 = vmax.f32 %v729_v27, %v763_v32 }
 0x1bd   : > { %v733_v36 = vpop.f32.mrf.mxu1  ;;  %1393 = vmatmul.mubr.f32.gmra.mxu0 %v777_v31 }
 0x1be   : > { %v778_v37 = vmax.f32 %v724_v30, %v762_v34  ;;  %v734_v38 = vadd.f32 %v1810_v51, %v733_v36  ;;  %v765_v40 = vmul.f32 0.01, %v739_v35 }
 0x1bf   : > { %v1347_v41 = vpop.f32.mrf.mxu1 }
 0x1c0   : > { %v764_v42 = vmul.f32 0.01, %v734_v38  ;;  %v749_v43 = vadd.f32 %v1347_v41, %v1810_v51  ;;  %1395 = vmatprep.mubr.f32.mxu0 %v778_v37  ;;  %v781_v48 = vmax.f32 %v739_v35, %v765_v40 }
 0x1c1   : > { %v743_v44 = vpop.f32.mrf.mxu1  ;;  %1396 = vmatmul.mubr.f32.gmra.mxu0 %v779_v39 }
 0x1c2   : > { %v780_v45 = vmax.f32 %v734_v38, %v764_v42  ;;  %v744_v47 = vadd.f32 %v1810_v51, %v743_v44  ;;  %v767_v49 = vmul.f32 0.01, %v749_v43  ;;  %v1546_v51 = vmov 0  }
 0x1c3   : > { %1481 = vset.pattern.permute.xlu0 %v1546_v51 }
 0x1c4   : > { %v766_v46 = vmul.f32 0.01, %v744_v47  ;;  %1398 = vmatprep.mubr.f32.mxu0 %v780_v45  ;;  %v783_v52 = vmax.f32 %v749_v43, %v767_v49  ;;  %988 = vperm.xlu0 %1481, %v985_v54  }
 0x1c5   : > { %1399 = vmatmul.mubr.f32.gmra.mxu0 %v781_v48 }
 0x1c6   : > { %v782_v50 = vmax.f32 %v744_v47, %v766_v46 }
 0x1c8   : > { %1401 = vmatprep.mubr.f32.mxu0 %v782_v50 }
 0x1c9   : > { %1402 = vmatmul.mubr.f32.gmra.mxu0 %v783_v52 }
 0x26d   : > { %v1833_v55 = vpop.f32.mrf.mxu0 }
 0x26e   : > { %v879_v48 = vadd.f32 %v1833_v55, %v1844_v5 }
 0x26f   : > { %v1835_v56 = vpop.f32.mrf.mxu0 }
 0x270   : > { %v953_v50 = vmul.f32 0.01, %v879_v48  ;;  %v874_v52 = vadd.f32 %v1844_v5, %v1835_v56  ;;  %v989_v56 = vpop.permute.xlu0 %988 }
 0x271   : > { %v1837_v57 = vpop.f32.mrf.mxu0 }
 0x272   : > { %v889_v41 = vadd.f32 %v1837_v57, %v1844_v5  ;;  %v969_v51 = vmax.f32 %v879_v48, %v953_v50  ;;  %v952_v57 = vmul.f32 0.01, %v874_v52 }
 0x273   : > { %v1839_v58 = vpop.f32.mrf.mxu0 }
 0x274   : > { %v955_v44 = vmul.f32 0.01, %v889_v41  ;;  %v884_v45 = vadd.f32 %v1844_v5, %v1839_v58  ;;  %v968_v55 = vmax.f32 %v874_v52, %v952_v57  ;;  %v984_v58 = vld [vmem:[%s1931_s7] sm:$0x7] }
 0x275   : > { %v1388_v59 = vpop.f32.mrf.mxu0 }
 0x276   : > { %v899_v35 = vadd.f32 %v1388_v59, %v1844_v5  ;;  %v971_v49 = vmax.f32 %v889_v41, %v955_v44  ;;  %v954_v46 = vmul.f32 0.01, %v884_v45 }
 0x277   : > { %v893_v60 = vpop.f32.mrf.mxu0 }
 0x278   : > { %v957_v38 = vmul.f32 0.01, %v899_v35  ;;  %v894_v39 = vadd.f32 %v1844_v5, %v893_v60  ;;  %v970_v54 = vmax.f32 %v884_v45, %v954_v46 }
 0x279   : > { %v1391_v61 = vpop.f32.mrf.mxu0 }
 0x27a   : > { %v909_v29 = vadd.f32 %v1391_v61, %v1844_v5  ;;  %v973_v42 = vmax.f32 %v899_v35, %v957_v38  ;;  %v956_v43 = vmul.f32 0.01, %v894_v39 }
 0x27b   : > { %v903_v62 = vpop.f32.mrf.mxu0 }
 0x27c   : > { %v959_v32 = vmul.f32 0.01, %v909_v29  ;;  %v904_v33 = vadd.f32 %v1844_v5, %v903_v62  ;;  %v972_v47 = vmax.f32 %v894_v39, %v956_v43 }
 0x27d   : > { %v1394_v63 = vpop.f32.mrf.mxu0 }
 0x27e   : > { %v919_v23 = vadd.f32 %v1394_v63, %v1844_v5  ;;  %v975_v36 = vmax.f32 %v909_v29, %v959_v32  ;;  %v958_v37 = vmul.f32 0.01, %v904_v33 }
 0x27f   : > { %v913_v0 = vpop.f32.mrf.mxu0 }
 0x280   : > { %v961_v26 = vmul.f32 0.01, %v919_v23  ;;  %v914_v27 = vadd.f32 %v1844_v5, %v913_v0  ;;  %v974_v40 = vmax.f32 %v904_v33, %v958_v37 }
 0x281   : > { %v1397_v1 = vpop.f32.mrf.mxu0 }
 0x282   : > { %v929_v17 = vadd.f32 %v1397_v1, %v1844_v5  ;;  %v977_v30 = vmax.f32 %v919_v23, %v961_v26  ;;  %v960_v31 = vmul.f32 0.01, %v914_v27 }
 0x283   : > { %v923_v2 = vpop.f32.mrf.mxu0 }
 0x284   : > { %v963_v20 = vmul.f32 0.01, %v929_v17  ;;  %v924_v21 = vadd.f32 %v1844_v5, %v923_v2  ;;  %v976_v34 = vmax.f32 %v914_v27, %v960_v31 }
 0x285   : > { %v1400_v3 = vpop.f32.mrf.mxu0 }
 0x286   : > { %v939_v11 = vadd.f32 %v1400_v3, %v1844_v5  ;;  %v979_v24 = vmax.f32 %v929_v17, %v963_v20  ;;  %v962_v25 = vmul.f32 0.01, %v924_v21 }
 0x287   : > { %v933_v4 = vpop.f32.mrf.mxu0 }
 0x288   : > { %v965_v14 = vmul.f32 0.01, %v939_v11  ;;  %v934_v15 = vadd.f32 %v1844_v5, %v933_v4  ;;  %v978_v28 = vmax.f32 %v924_v21, %v962_v25 }
 0x289   : > { %v1403_v6 = vpop.f32.mrf.mxu0 }
 0x28a   : > { %v949_v7 = vadd.f32 %v1403_v6, %v1844_v5  ;;  %v981_v18 = vmax.f32 %v939_v11, %v965_v14  ;;  %v964_v19 = vmul.f32 0.01, %v934_v15 }
 0x28b   : > { %v943_v8 = vpop.f32.mrf.mxu0 }
 0x28c   : > { %v967_v9 = vmul.f32 0.01, %v949_v7  ;;  %v944_v10 = vadd.f32 %v1844_v5, %v943_v8  ;;  %v980_v22 = vmax.f32 %v934_v15, %v964_v19 }
 0x28e   : > { %v983_v12 = vmax.f32 %v949_v7, %v967_v9  ;;  %v966_v13 = vmul.f32 0.01, %v944_v10 }
 0x290   : > { %1405 = vmatpush3.xpose.msra.mxu1 %v983_v12  ;;  %v982_v16 = vmax.f32 %v944_v10, %v966_v13 }
 0x291   : > { %1406 = vmatprep.subr.mxu1 %v1544_v53 }
 0x294   : > { %1407 = vmatpush3.xpose.msra.mxu1 %v982_v16 }
 0x295   : > { %1408 = vmatprep.subr.mxu1 %v1544_v53 }
 0x298   : > { %1409 = vmatpush3.xpose.msra.mxu1 %v981_v18 }
 0x299   : > { %1410 = vmatprep.subr.mxu1 %v1544_v53 }
 0x29c   : > { %1411 = vmatpush3.xpose.msra.mxu1 %v980_v22 }
 0x29d   : > { %1412 = vmatprep.subr.mxu1 %v1544_v53 }
 0x2a0   : > { %1413 = vmatpush3.xpose.msra.mxu1 %v979_v24 }
 0x2a1   : > { %1414 = vmatprep.subr.mxu1 %v1544_v53 }
 0x2a4   : > { %1415 = vmatpush3.xpose.msra.mxu1 %v978_v28 }
 0x2a5   : > { %1416 = vmatprep.subr.mxu1 %v1544_v53 }
 0x2a8   : > { %1417 = vmatpush3.xpose.msra.mxu1 %v977_v30 }
 0x2a9   : > { %1418 = vmatprep.subr.mxu1 %v1544_v53 }
 0x2ac   : > { %1419 = vmatpush3.xpose.msra.mxu1 %v976_v34 }
 0x2ad   : > { %1420 = vmatprep.subr.mxu1 %v1544_v53 }
 0x2b0   : > { %1421 = vmatpush3.xpose.msra.mxu1 %v975_v36 }
 0x2b1   : > { %1422 = vmatprep.subr.mxu1 %v1544_v53 }
 0x2b4   : > { %1423 = vmatpush3.xpose.msra.mxu1 %v974_v40 }
 0x2b5   : > { %1424 = vmatprep.subr.mxu1 %v1544_v53 }
 0x2b8   : > { %1425 = vmatpush3.xpose.msra.mxu1 %v973_v42 }
 0x2b9   : > { %1426 = vmatprep.subr.mxu1 %v1544_v53 }
 0x2bc   : > { %1427 = vmatpush3.xpose.msra.mxu1 %v972_v47 }
 0x2bd   : > { %1428 = vmatprep.subr.mxu1 %v1544_v53 }
 0x2c0   : > { %1429 = vmatpush3.xpose.msra.mxu1 %v971_v49 }
 0x2c1   : > { %1430 = vmatprep.subr.mxu1 %v1544_v53 }
 0x2c4   : > { %1431 = vmatpush3.xpose.msra.mxu1 %v970_v54 }
 0x2c5   : > { %1432 = vmatprep.subr.mxu1 %v1544_v53 }
 0x2c8   : > { %1433 = vmatpush3.xpose.msra.mxu1 %v969_v51 }
 0x2c9   : > { %1434 = vmatprep.subr.mxu1 %v1544_v53 }
 0x2cc   : > { %1435 = vmatpush3.xpose.msra.mxu1 %v968_v55 }
 0x2cf   : > { %1437 = vmatmul.mubr.f32.vlgmr.msra.gmra.mxu1 %v984_v58 }
 0x38f   : > { %v1057_v59 = vpop.f32.mrf.mxu1 }
 0x390   : > { %v1058_v60 = vadd.f32 %v1057_v59, %v989_v56 }
 0x391   : > { %v1438_v53 = vpop.f32.mrf.mxu1 }
 0x392   : > { %1061 = vst [vmem:[%s326_s23] sm:$0x7] %v1058_v60 }
 0x393   : > { %1495 = shalt.err (!%p1492_p3)
}
 0x394   : > { %s1496_s22 = scalar_lea.hbm %s1889_s25, 64  ;;  %s1500_s23 = scalar_lea.hbm %s1933_s9, 128 }
 0x395   : > { %p1497_p4 = scmp.ne.s32.totalorder %s1889_s25, %s1496_s22  ;;  %p1501_p9 = scmp.lt.s32.totalorder %s1889_s25, %s1933_s9 }
 0x396   : > { %p1502_p10 = scmp.lt.s32.totalorder %s1500_s23, %s1496_s22 }
 0x397   : > { %p1498_p7 = pnand %p1497_p4, %p1636_p5 }
 0x398   : > { %p1503_p11 = por %p1502_p10, %p1501_p9 }
 0x399   : > { %p1499_p8 = pneg %p1498_p7 }
 0x39b   : > { %p1504_p12 = pnand %p1503_p11, %p1499_p8 }
 0x39d   : > { %1507 = shalt.err (!%p1504_p12)
}
 0x39e   : > { %1439 = dma.vmem_to_hbm [thread:$0]  (%p1636_p5), %s1077_s24, 64, %s1889_s25, %s1063_s29  }
 0x39f PF: > { %p1445_p13 = scmp.ge.s32.totalorder %s1542_s12, 2  ;;  %s1088_s14 = sand.u32 1, %s1530_s30  }
 0x3a0   : > { %s1089_s16 = scalar_lea.sflag [#allocation3], %s1088_s14 }
 0x3a1   : > { %p1442_p0 = pnand %p1445_p13, %p1640_p6 }
 0x3a3   : > { %p1443_p1 = pneg %p1442_p0 }
 0x3a5   : > { %1525 = dma.done.wait (%p1443_p1), %s1089_s16, 64  }
 0x3a6   : > { %1527 = vsyncadd (%p1443_p1), %s1089_s16, 4294967232  ;;  %p19_p2 = scmp.ge.s32.totalorder %s1623_s15, 4   ;;  %s1936_s30 = smov %s1534_s10 }
 0x3a7   : > { %s1937_s10 = smov %s1538_s11  ;;  %s1938_s11 = smov %s1634_s18 }
 0x3a8   : > { %s1939_s12 = smov %s1623_s15  ;;  %21 = sbr.rel (!%p19_p2) target bundleno = 3 (0x3), region = 91 }
 0x3ad   :  { %1094 = vsyncpa [#allocation3], 1 }
 0x3ae   :  { %1096 = vsyncpa [#allocation3 + $0x1], 1 }

</bundles_post_ra>
